<compile_context>
chip_gen: v5e
topology: v5e:2x2
jax: 0.10.0
libtpu: 0.0.40
codegen_flags: <defaults>
</compile_context>

<pallas_src>
import functools

import jax
import jax.numpy as jnp
from jax.experimental import pallas as pl
from jax.experimental.pallas import tpu as pltpu

_H1 = 128   # first_layer width
_HA = 32    # actor_layer width
_HC = 64    # critic_layer width
_BR = 128   # padded fused branch width (32 + 64 -> 128 lanes)


def _round_up(x, m):
    return (x + m - 1) // m * m


def _cdiv(a, b):
    return -(-a // b)


# ---------------------------------------------------------------------------
# Kernel
# ---------------------------------------------------------------------------
def _actor_critic_kernel(x_ref, w1_ref, b1_ref, wbr_ref, bbr_ref,
                         wah_ref, bah_ref, wch_ref, bch_ref,
                         logits_ref, value_ref):
    # in-kernel bf16 cast of x (avoids a wrapper-side HBM round trip of x)
    x = x_ref[...].astype(w1_ref.dtype)                               # [TB, F] bf16

    # first_layer + ReLU (MXU, f32 accumulate)
    h = jnp.dot(x, w1_ref[...], preferred_element_type=jnp.float32) + b1_ref[...]
    h = jnp.maximum(h, 0.0).astype(wbr_ref.dtype)                     # [TB, 128]

    # fused actor|critic branch + ReLU
    # TODO(synk): x.detach() on the critic branch is autograd-only; forward is identical.
    br = jnp.dot(h, wbr_ref[...], preferred_element_type=jnp.float32) + bbr_ref[...]
    br = jnp.maximum(br, 0.0).astype(wah_ref.dtype)                   # [TB, 128]

    # heads: weights are zero outside their own branch's lanes, so the full
    # 128-wide contraction reproduces the per-branch matmuls exactly.
    logits = jnp.dot(br, wah_ref[...], preferred_element_type=jnp.float32) + bah_ref[...]
    value = jnp.dot(br, wch_ref[...], preferred_element_type=jnp.float32) + bch_ref[...]
    logits_ref[...] = logits.astype(logits_ref.dtype)                 # [TB, A]  f32
    value_ref[...] = value.astype(value_ref.dtype)                    # [TB, 1]  f32


# ---------------------------------------------------------------------------
# Wrapper
# ---------------------------------------------------------------------------
@functools.partial(jax.jit, static_argnames=("n_actions", "block_rows"))
def actor_critic_forward(x, packed, *, n_actions, block_rows=4096):
    """x: [B, F] float32.  packed: dict from pack_params().

    Returns (actor_logits [B, n_actions] f32, value [B, 1] f32)."""
    B, F = x.shape

    # Balanced batch tiling: tiles of (nearly) equal size, rows padded to 8.
    n_tiles = max(1, _cdiv(B, block_rows))
    if n_tiles == 1 and B >= 4096:
        n_tiles = 2                      # v7x: keep both TensorCores busy
    tb = _round_up(_cdiv(B, n_tiles), 8)
    b_pad = n_tiles * tb
    if b_pad != B:
        x = jnp.pad(x, ((0, b_pad - B), (0, 0)))

    def const_spec(arr):
        return pl.BlockSpec(arr.shape, lambda i: (0,) * arr.ndim)

    logits, value = pl.pallas_call(
        _actor_critic_kernel,
        out_shape=(
            jax.ShapeDtypeStruct((b_pad, n_actions), jnp.float32),
            jax.ShapeDtypeStruct((b_pad, 1), jnp.float32),
        ),
        grid=(n_tiles,),
        in_specs=[
            pl.BlockSpec((tb, F), lambda i: (i, 0)),   # x: streamed per tile (f32)
            const_spec(packed["w1"]),                  # weights/biases stay resident
            const_spec(packed["b1"]),
            const_spec(packed["wbr"]),
            const_spec(packed["bbr"]),
            const_spec(packed["wah"]),
            const_spec(packed["bah"]),
            const_spec(packed["wch"]),
            const_spec(packed["bch"]),
        ],
        out_specs=(
            pl.BlockSpec((tb, n_actions), lambda i: (i, 0)),
            pl.BlockSpec((tb, 1), lambda i: (i, 0)),
        ),
        compiler_params=pltpu.CompilerParams(
            dimension_semantics=("parallel",),   # shard batch tiles over TCs (v7x)
        ),
    )(x, packed["w1"], packed["b1"], packed["wbr"], packed["bbr"],
      packed["wah"], packed["bah"], packed["wch"], packed["bch"])

    if b_pad != B:
        logits = logits[:B]
        value = value[:B]
    return logits, value


# ---------------------------------------------------------------------------
# Parameter construction / packing
# ---------------------------------------------------------------------------
def init_params(key, input_size, n_actions):
    """PyTorch-Linear-style init (uniform +-1/sqrt(fan_in)); weights as [in, out]."""
    def linear(k, fan_in, fan_out):
        kw, kb = jax.random.split(k)
        bound = 1.0 / jnp.sqrt(float(fan_in))
        w = jax.random.uniform(kw, (fan_in, fan_out), jnp.float32, -bound, bound)
        b = jax.random.uniform(kb, (fan_out,), jnp.float32, -bound, bound)
        return w, b

    k1, k2, k3, k4, k5 = jax.random.split(key, 5)
    w1, b1 = linear(k1, input_size, _H1)
    wc, bc = linear(k2, _H1, _HC)
    wa, ba = linear(k3, _H1, _HA)
    wch, bch = linear(k4, _HC, 1)
    wah, bah = linear(k5, _HA, n_actions)
    return dict(w1=w1, b1=b1, wa=wa, ba=ba, wc=wc, bc=bc,
                wah=wah, bah=bah, wch=wch, bch=bch)


def pack_params(p, n_actions, param_dtype=jnp.bfloat16):
    """Fuse branch weights, zero-pad head weights to the 128-lane branch, cast to bf16."""
    w1 = p["w1"].astype(param_dtype)                                  # [F, 128]
    b1 = p["b1"].reshape(1, _H1).astype(jnp.float32)

    # fused branch weight: [128, 128] = [ Wa | Wc | 0 ]
    wbr = jnp.zeros((_H1, _BR), jnp.float32)
    wbr = wbr.at[:, :_HA].set(p["wa"]).at[:, _HA:_HA + _HC].set(p["wc"])
    bbr = jnp.zeros((1, _BR), jnp.float32)
    bbr = bbr.at[0, :_HA].set(p["ba"]).at[0, _HA:_HA + _HC].set(p["bc"])

    # heads lifted to the fused 128-lane branch; off-branch rows exactly 0
    wah = jnp.zeros((_BR, n_actions), jnp.float32).at[:_HA, :].set(p["wah"])
    wch = jnp.zeros((_BR, 1), jnp.float32).at[_HA:_HA + _HC, :].set(p["wch"])
    bah = p["bah"].reshape(1, n_actions).astype(jnp.float32)
    bch = p["bch"].reshape(1, 1).astype(jnp.float32)

    return dict(w1=w1, b1=b1,
                wbr=wbr.astype(param_dtype), bbr=bbr,
                wah=wah.astype(param_dtype), bah=bah,
                wch=wch.astype(param_dtype), bch=bch)


# ---------------------------------------------------------------------------
# Pure-JAX reference (same bf16 rounding sequence as the kernel, f32 accumulation)
# ---------------------------------------------------------------------------
def reference_forward(x, p, dtype=jnp.bfloat16):
    cast = lambda a: a.astype(dtype).astype(jnp.float32)
    xb = cast(x)
    h = jax.nn.relu(xb @ cast(p["w1"]) + p["b1"].reshape(1, -1))
    hb = cast(h)
    a = jax.nn.relu(hb @ cast(p["wa"]) + p["ba"].reshape(1, -1))
    c = jax.nn.relu(hb @ cast(p["wc"]) + p["bc"].reshape(1, -1))
    logits = cast(a) @ cast(p["wah"]) + p["bah"].reshape(1, -1)
    value = cast(c) @ cast(p["wch"]) + p["bch"].reshape(1, -1)
    return logits, value


if __name__ == "__main__":
    key = jax.random.PRNGKey(0)
    k_param, k_x = jax.random.split(key)

    input_size = 16
    n_actions = 4

    params = init_params(k_param, input_size, n_actions)
    packed = pack_params(params, n_actions)

    # full-tile case
    batch = 8
    x = jax.random.normal(k_x, (batch, input_size), jnp.float32)
    actor_logits, value = actor_critic_forward(x, packed, n_actions=n_actions)
    actor_logits = jax.block_until_ready(actor_logits)
    value = jax.block_until_ready(value)
    ref_logits, ref_value = reference_forward(x, params)
    assert actor_logits.shape == (batch, n_actions)
    assert value.shape == (batch, 1)
    assert jnp.allclose(actor_logits, ref_logits, atol=1e-3, rtol=1e-3)
    assert jnp.allclose(value, ref_value, atol=1e-3, rtol=1e-3)

    # partial-tile (row-padding) case
    batch2 = 13
    x2 = jax.random.normal(jax.random.PRNGKey(1), (batch2, input_size), jnp.float32)
    logits2, value2 = actor_critic_forward(x2, packed, n_actions=n_actions)
    logits2 = jax.block_until_ready(logits2)
    value2 = jax.block_until_ready(value2)
    ref_logits2, ref_value2 = reference_forward(x2, params)
    assert logits2.shape == (batch2, n_actions)
    assert value2.shape == (batch2, 1)
    assert jnp.allclose(logits2, ref_logits2, atol=1e-3, rtol=1e-3)
    assert jnp.allclose(value2, ref_value2, atol=1e-3, rtol=1e-3)

    print("KERNEL_OK")
</pallas_src>

<mosaic_0001>
module attributes {stable_mosaic.version = 11 : i64} {
  func.func @_actor_critic_kernel(%arg0: i32, %arg1: memref<8x16xf32, #tpu.memory_space<vmem>>, %arg2: memref<16x128xbf16, #tpu.memory_space<vmem>>, %arg3: memref<1x128xf32, #tpu.memory_space<vmem>>, %arg4: memref<128x128xbf16, #tpu.memory_space<vmem>>, %arg5: memref<1x128xf32, #tpu.memory_space<vmem>>, %arg6: memref<128x4xbf16, #tpu.memory_space<vmem>>, %arg7: memref<1x4xf32, #tpu.memory_space<vmem>>, %arg8: memref<128x1xbf16, #tpu.memory_space<vmem>>, %arg9: memref<1x1xf32, #tpu.memory_space<vmem>>, %arg10: memref<8x4xf32, #tpu.memory_space<vmem>>, %arg11: memref<8x1xf32, #tpu.memory_space<vmem>>) attributes {dimension_semantics = [#tpu.dimension_semantics<parallel>], iteration_bounds = array<i64: 1>, scalar_prefetch = 0 : i64, scratch_operands = 0 : i64, tpu.core_type = #tpu.core_type<tc>, window_params = [{transform_indices = @transform_0, window_bounds = array<i64: 8, 16>}, {pipeline_mode = #tpu.pipeline_mode<synchronous>, transform_indices = @transform_1, window_bounds = array<i64: 16, 128>}, {pipeline_mode = #tpu.pipeline_mode<synchronous>, transform_indices = @transform_2, window_bounds = array<i64: 1, 128>}, {pipeline_mode = #tpu.pipeline_mode<synchronous>, transform_indices = @transform_3, window_bounds = array<i64: 128, 128>}, {pipeline_mode = #tpu.pipeline_mode<synchronous>, transform_indices = @transform_4, window_bounds = array<i64: 1, 128>}, {pipeline_mode = #tpu.pipeline_mode<synchronous>, transform_indices = @transform_5, window_bounds = array<i64: 128, 4>}, {pipeline_mode = #tpu.pipeline_mode<synchronous>, transform_indices = @transform_6, window_bounds = array<i64: 1, 4>}, {pipeline_mode = #tpu.pipeline_mode<synchronous>, transform_indices = @transform_7, window_bounds = array<i64: 128, 1>}, {pipeline_mode = #tpu.pipeline_mode<synchronous>, transform_indices = @transform_8, window_bounds = array<i64: 1, 1>}, {transform_indices = @transform_9, window_bounds = array<i64: 8, 4>}, {transform_indices = @transform_10, window_bounds = array<i64: 8, 1>}]} {
    %c0 = arith.constant 0 : index
    %c0_0 = arith.constant 0 : index
    %0 = vector.load %arg1[%c0, %c0_0] : memref<8x16xf32, #tpu.memory_space<vmem>>, vector<8x16xf32>
    %1 = arith.truncf %0 : vector<8x16xf32> to vector<8x16xbf16>
    %c0_1 = arith.constant 0 : index
    %c0_2 = arith.constant 0 : index
    %2 = vector.load %arg2[%c0_1, %c0_2] : memref<16x128xbf16, #tpu.memory_space<vmem>>, vector<16x128xbf16>
    %cst = arith.constant dense<0.000000e+00> : vector<8x128xf32>
    %3 = tpu.matmul %1, %2, %cst {dimension_numbers = #tpu.dot_dimension_numbers<[1], [0], [0], [1], [0, 0, 1, 1], [], []>} : vector<8x16xbf16>, vector<16x128xbf16>, vector<8x128xf32> -> vector<8x128xf32>
    %c0_3 = arith.constant 0 : index
    %c0_4 = arith.constant 0 : index
    %4 = vector.load %arg3[%c0_3, %c0_4] : memref<1x128xf32, #tpu.memory_space<vmem>>, vector<1x128xf32>
    %5 = vector.broadcast %4 : vector<1x128xf32> to vector<8x128xf32>
    %6 = arith.addf %3, %5 : vector<8x128xf32>
    %cst_5 = arith.constant 0.000000e+00 : f32
    %7 = vector.broadcast %cst_5 : f32 to vector<8x128xf32>
    %8 = arith.maximumf %6, %7 : vector<8x128xf32>
    %9 = arith.truncf %8 : vector<8x128xf32> to vector<8x128xbf16>
    %c0_6 = arith.constant 0 : index
    %c0_7 = arith.constant 0 : index
    %10 = vector.load %arg4[%c0_6, %c0_7] : memref<128x128xbf16, #tpu.memory_space<vmem>>, vector<128x128xbf16>
    %cst_8 = arith.constant dense<0.000000e+00> : vector<8x128xf32>
    %11 = tpu.matmul %9, %10, %cst_8 {dimension_numbers = #tpu.dot_dimension_numbers<[1], [0], [0], [1], [0, 0, 1, 1], [], []>} : vector<8x128xbf16>, vector<128x128xbf16>, vector<8x128xf32> -> vector<8x128xf32>
    %c0_9 = arith.constant 0 : index
    %c0_10 = arith.constant 0 : index
    %12 = vector.load %arg5[%c0_9, %c0_10] : memref<1x128xf32, #tpu.memory_space<vmem>>, vector<1x128xf32>
    %13 = vector.broadcast %12 : vector<1x128xf32> to vector<8x128xf32>
    %14 = arith.addf %11, %13 : vector<8x128xf32>
    %cst_11 = arith.constant 0.000000e+00 : f32
    %15 = vector.broadcast %cst_11 : f32 to vector<8x128xf32>
    %16 = arith.maximumf %14, %15 : vector<8x128xf32>
    %17 = arith.truncf %16 : vector<8x128xf32> to vector<8x128xbf16>
    %c0_12 = arith.constant 0 : index
    %c0_13 = arith.constant 0 : index
    %18 = vector.load %arg6[%c0_12, %c0_13] : memref<128x4xbf16, #tpu.memory_space<vmem>>, vector<128x4xbf16>
    %cst_14 = arith.constant dense<0.000000e+00> : vector<8x4xf32>
    %19 = tpu.matmul %17, %18, %cst_14 {dimension_numbers = #tpu.dot_dimension_numbers<[1], [0], [0], [1], [0, 0, 1, 1], [], []>} : vector<8x128xbf16>, vector<128x4xbf16>, vector<8x4xf32> -> vector<8x4xf32>
    %c0_15 = arith.constant 0 : index
    %c0_16 = arith.constant 0 : index
    %20 = vector.load %arg7[%c0_15, %c0_16] : memref<1x4xf32, #tpu.memory_space<vmem>>, vector<1x4xf32>
    %21 = vector.broadcast %20 : vector<1x4xf32> to vector<8x4xf32>
    %22 = arith.addf %19, %21 : vector<8x4xf32>
    %c0_17 = arith.constant 0 : index
    %c0_18 = arith.constant 0 : index
    %23 = vector.load %arg8[%c0_17, %c0_18] : memref<128x1xbf16, #tpu.memory_space<vmem>>, vector<128x1xbf16>
    %cst_19 = arith.constant dense<0.000000e+00> : vector<8x1xf32>
    %24 = tpu.matmul %17, %23, %cst_19 {dimension_numbers = #tpu.dot_dimension_numbers<[1], [0], [0], [1], [0, 0, 1, 1], [], []>} : vector<8x128xbf16>, vector<128x1xbf16>, vector<8x1xf32> -> vector<8x1xf32>
    %c0_20 = arith.constant 0 : index
    %c0_21 = arith.constant 0 : index
    %25 = vector.load %arg9[%c0_20, %c0_21] : memref<1x1xf32, #tpu.memory_space<vmem>>, vector<1x1xf32>
    %26 = vector.broadcast %25 : vector<1x1xf32> to vector<8x1xf32>
    %27 = arith.addf %24, %26 : vector<8x1xf32>
    %c0_22 = arith.constant 0 : index
    %c0_23 = arith.constant 0 : index
    %28 = vector.load %arg10[%c0_22, %c0_23] : memref<8x4xf32, #tpu.memory_space<vmem>>, vector<8x4xf32>
    tpu.vector_store %arg10[%c0_22, %c0_23], %22 {strides = array<i32>} : memref<8x4xf32, #tpu.memory_space<vmem>>, vector<8x4xf32>,
    %c0_24 = arith.constant 0 : index
    %c0_25 = arith.constant 0 : index
    %29 = vector.load %arg11[%c0_24, %c0_25] : memref<8x1xf32, #tpu.memory_space<vmem>>, vector<8x1xf32>
    tpu.vector_store %arg11[%c0_24, %c0_25], %27 {strides = array<i32>} : memref<8x1xf32, #tpu.memory_space<vmem>>, vector<8x1xf32>,
    return
  }
  func.func @transform_0(%arg0: i32) -> (i32, i32) {
    %c0_i32 = arith.constant 0 : i32
    %c0_i32_0 = arith.constant 0 : i32
    return %arg0, %c0_i32 : i32, i32
  }
  func.func @transform_1(%arg0: i32) -> (i32, i32) {
    %c0_i32 = arith.constant 0 : i32
    %c0_i32_0 = arith.constant 0 : i32
    %c0_i32_1 = arith.constant 0 : i32
    return %c0_i32, %c0_i32_0 : i32, i32
  }
  func.func @transform_2(%arg0: i32) -> (i32, i32) {
    %c0_i32 = arith.constant 0 : i32
    %c0_i32_0 = arith.constant 0 : i32
    %c0_i32_1 = arith.constant 0 : i32
    return %c0_i32, %c0_i32_0 : i32, i32
  }
  func.func @transform_3(%arg0: i32) -> (i32, i32) {
    %c0_i32 = arith.constant 0 : i32
    %c0_i32_0 = arith.constant 0 : i32
    %c0_i32_1 = arith.constant 0 : i32
    return %c0_i32, %c0_i32_0 : i32, i32
  }
  func.func @transform_4(%arg0: i32) -> (i32, i32) {
    %c0_i32 = arith.constant 0 : i32
    %c0_i32_0 = arith.constant 0 : i32
    %c0_i32_1 = arith.constant 0 : i32
    return %c0_i32, %c0_i32_0 : i32, i32
  }
  func.func @transform_5(%arg0: i32) -> (i32, i32) {
    %c0_i32 = arith.constant 0 : i32
    %c0_i32_0 = arith.constant 0 : i32
    %c0_i32_1 = arith.constant 0 : i32
    return %c0_i32, %c0_i32_0 : i32, i32
  }
  func.func @transform_6(%arg0: i32) -> (i32, i32) {
    %c0_i32 = arith.constant 0 : i32
    %c0_i32_0 = arith.constant 0 : i32
    %c0_i32_1 = arith.constant 0 : i32
    return %c0_i32, %c0_i32_0 : i32, i32
  }
  func.func @transform_7(%arg0: i32) -> (i32, i32) {
    %c0_i32 = arith.constant 0 : i32
    %c0_i32_0 = arith.constant 0 : i32
    %c0_i32_1 = arith.constant 0 : i32
    return %c0_i32, %c0_i32_0 : i32, i32
  }
  func.func @transform_8(%arg0: i32) -> (i32, i32) {
    %c0_i32 = arith.constant 0 : i32
    %c0_i32_0 = arith.constant 0 : i32
    %c0_i32_1 = arith.constant 0 : i32
    return %c0_i32, %c0_i32_0 : i32, i32
  }
  func.func @transform_9(%arg0: i32) -> (i32, i32) {
    %c0_i32 = arith.constant 0 : i32
    %c0_i32_0 = arith.constant 0 : i32
    return %arg0, %c0_i32 : i32, i32
  }
  func.func @transform_10(%arg0: i32) -> (i32, i32) {
    %c0_i32 = arith.constant 0 : i32
    %c0_i32_0 = arith.constant 0 : i32
    return %arg0, %c0_i32 : i32, i32
  }
}

</mosaic_0001>

<bundles_post_ra>
// kernel: actor_critic_forward.1
= control target key start
LH: loop header
LB: loop body
LE: loop exit
PB: predicated region body
PF: predicated region fallthrough
CT: control target
= control target key end

     0   :  { %vm51_vm0 = vcmask 130048   ;;  %vm315_vm1 = vcmask 31744   ;;  %vm317_vm2 = vcmask 7168   ;;  %s608_s1 = inlined_call_operand.vmem [shape: bf16[16,128], index: 1, kind: input, shape index: {}]   ;;  %s609_s0 = inlined_call_operand.vmem [shape: f32[8,16], index: 0, kind: input, shape index: {}]   ;;  %s610_s3 = inlined_call_operand.vmem [shape: bf16[128,128], index: 3, kind: input, shape index: {}]   ;;  %s611_s2 = inlined_call_operand.vmem [shape: f32[1,128], index: 2, kind: input, shape index: {}]   ;;  %s612_s4 = inlined_call_operand.vmem [shape: f32[1,128], index: 4, kind: input, shape index: {}]   ;;  %s613_s5 = inlined_call_operand.vmem [shape: bf16[128,4], index: 5, kind: input, shape index: {}]   ;;  %s614_s7 = inlined_call_operand.vmem [shape: bf16[128,1], index: 7, kind: input, shape index: {}]   ;;  %s615_s6 = inlined_call_operand.vmem [shape: f32[1,4], index: 6, kind: input, shape index: {}]   ;;  %s616_s8 = inlined_call_operand.<no memory space> [shape: f32[1,1], index: 8, kind: input, shape index: {}]   ;;  %s617_s9 = inlined_call_operand.vmem [shape: f32[8,4], index: 9, kind: output, shape index: {0}]   ;;  %s618_s10 = inlined_call_operand.vmem [shape: f32[8,1], index: 10, kind: output, shape index: {1}]  }
   0x1   :  { %v428_v0 = vld [vmem:[%s608_s1] sm:$0xff]  ;;  %v436_v2 = vld [vmem:[%s610_s3 + $0x38] sm:$0xff]  ;;  %v435_v4 = vld [vmem:[%s610_s3 + $0x30] sm:$0xff]  ;;  %v16_v39 = vstv %s616_s8 }
   0x2   :  { %v37_v1 = vld [vmem:[%s609_s0] sm:$0xff]  ;;  %62 = vmatpush.bf16.msra.mxu0 %v428_v0  ;;  %138 = vmatpush.bf16.msra.mxu1 %v436_v2  ;;  %v434_v5 = vld [vmem:[%s610_s3 + $0x28] sm:$0xff]  ;;  %v432_v7 = vld [vmem:[%s610_s3 + $0x18] sm:$0xff]  ;;  %17 = vst [vmem:[#allocation2] sm:$0x1] %v16_v39 }
   0x3   :  { %v38_v3 = vpack.c.bf16 %v37_v1, %v37_v1  ;;  %v433_v6 = vld [vmem:[%s610_s3 + $0x20] sm:$0xff]  ;;  %v431_v8 = vld [vmem:[%s610_s3 + $0x10] sm:$0xff]  ;;  %v430_v9 = vld [vmem:[%s610_s3 + $0x8] sm:$0xff] }
   0x4   :  { %v429_v10 = vld [vmem:[%s610_s3] sm:$0xff]  ;;  %v444_v11 = vld [vmem:[%s613_s5 + $0x38] sm:$0xff]  ;;  %v443_v13 = vld [vmem:[%s613_s5 + $0x30] sm:$0xff] }
   0x5   :  { %331 = vmatmul.msk.bf16.vlgmr.msra.gmra.mxu0 %vm51_vm0, %v38_v3  ;;  %v452_v12 = vld [vmem:[%s614_s7 + $0x38] sm:$0xff]  ;;  %221 = vmatpush.bf16.msra.mxu2 %v444_v11  ;;  %v451_v14 = vld [vmem:[%s614_s7 + $0x30] sm:$0xff]  ;;  %v442_v15 = vld [vmem:[%s613_s5 + $0x28] sm:$0xff] }
   0x6   :  { %139 = vmatpush.bf16.msra.mxu1 %v435_v4  ;;  %302 = vmatpush.bf16.msra.mxu3 %v452_v12  ;;  %v450_v16 = vld [vmem:[%s614_s7 + $0x28] sm:$0xff]  ;;  %v441_v17 = vld [vmem:[%s613_s5 + $0x20] sm:$0xff]  ;;  %v440_v19 = vld [vmem:[%s613_s5 + $0x18] sm:$0xff] }
   0x7   :  { %v449_v18 = vld [vmem:[%s614_s7 + $0x20] sm:$0xff]  ;;  %v448_v20 = vld [vmem:[%s614_s7 + $0x18] sm:$0xff]  ;;  %v439_v21 = vld [vmem:[%s613_s5 + $0x10] sm:$0xff] }
   0x8   :  { %v447_v22 = vld [vmem:[%s614_s7 + $0x10] sm:$0xff]  ;;  %v453_v23 = vld [vmem:[%s611_s2] ss:$0 sm:$0xff]  ;;  %v438_v29 = vld [vmem:[%s613_s5 + $0x8] sm:$0xff] }
   0x9   :  { %222 = vmatpush.bf16.msra.mxu2 %v443_v13  ;;  %v446_v30 = vld [vmem:[%s614_s7 + $0x8] sm:$0xff]  ;;  %v437_v31 = vld [vmem:[%s613_s5] sm:$0xff] }
   0xa   :  { %140 = vmatpush.bf16.msra.mxu1 %v434_v5  ;;  %303 = vmatpush.bf16.msra.mxu3 %v451_v14  ;;  %v445_v32 = vld [vmem:[%s614_s7] sm:$0xff] }
   0xb   :  { %v454_v33 = vld [vmem:[%s612_s4] ss:$0 sm:$0xff] }
   0xc   :  { %v455_v40 = vld [vmem:[%s615_s6] ss:$0 sm:$0xff] }
   0xd   :  { %223 = vmatpush.bf16.msra.mxu2 %v442_v15  ;;  %v456_v41 = vld [vmem:[#allocation2] ss:$0 sm:$0xff] }
   0xe   :  { %141 = vmatpush.bf16.msra.mxu1 %v433_v6  ;;  %304 = vmatpush.bf16.msra.mxu3 %v450_v16 }
  0x11   :  { %224 = vmatpush.bf16.msra.mxu2 %v441_v17 }
  0x12   :  { %142 = vmatpush.bf16.msra.mxu1 %v432_v7  ;;  %305 = vmatpush.bf16.msra.mxu3 %v449_v18 }
  0x15   :  { %225 = vmatpush.bf16.msra.mxu2 %v440_v19 }
  0x16   :  { %143 = vmatpush.bf16.msra.mxu1 %v431_v8  ;;  %306 = vmatpush.bf16.msra.mxu3 %v448_v20 }
  0x19   :  { %226 = vmatpush.bf16.msra.mxu2 %v439_v21 }
  0x1a   :  { %144 = vmatpush.bf16.msra.mxu1 %v430_v9  ;;  %307 = vmatpush.bf16.msra.mxu3 %v447_v22 }
  0x1d   :  { %227 = vmatpush.bf16.msra.mxu2 %v438_v29 }
  0x1e   :  { %145 = vmatpush.bf16.msra.mxu1 %v429_v10  ;;  %308 = vmatpush.bf16.msra.mxu3 %v446_v30 }
  0x21   :  { %228 = vmatpush.bf16.msra.mxu2 %v437_v31 }
  0x22   :  { %309 = vmatpush.bf16.msra.mxu3 %v445_v32 }
  0x82   :  { %v64_v24 = vpop.f32.mrf.mxu0 }
  0x83   :  { %v65_v25 = vadd.f32 %v453_v23, %v64_v24 }
  0x85   :  { %v68_v26 = vmax.f32 %v65_v25, 0.0 }
  0x87   :  { %v69_v27 = vpack.c.bf16 %v68_v26, %v68_v26 }
  0x89   :  { %146 = vmatmul.bf16.vlgmr.msra.gmra.mxu1 %v69_v27 }
  0x8a   :  { %v66_v28 = vpop.f32.mrf.mxu0 }
 0x106   :  { %v147_v34 = vpop.f32.mrf.mxu1 }
 0x107   :  { %v148_v35 = vadd.f32 %v454_v33, %v147_v34 }
 0x109   :  { %v151_v36 = vmax.f32 %v148_v35, 0.0 }
 0x10b   :  { %v152_v37 = vpack.c.bf16 %v151_v36, %v151_v36 }
 0x10d   :  { %229 = vmatmul.bf16.vlgmr.msra.gmra.mxu2 %v152_v37  ;;  %310 = vmatmul.bf16.vlgmr.msra.gmra.mxu3 %v152_v37 }
 0x10e   :  { %v149_v38 = vpop.f32.mrf.mxu1 }
 0x190   :  { %v230_v42 = vpop.f32.mrf.mxu2  ;;  %v311_v43 = vpop.f32.mrf.mxu3 }
 0x191   :  { %v231_v44 = vadd.f32 %v455_v40, %v230_v42  ;;  %v312_v45 = vadd.f32 %v456_v41, %v311_v43 }
 0x193   :  { %316 = vst.msk [vmem:[%s617_s9] sm:$0xff] %vm315_vm1, %v231_v44 }
 0x194   :  { %318 = vst.msk [vmem:[%s618_s10] sm:$0xff] %vm317_vm2, %v312_v45 }
 0x198   :  { %v232_v46 = vpop.f32.mrf.mxu2  ;;  %v313_v47 = vpop.f32.mrf.mxu3 }

</bundles_post_ra>
